<compile_context>
chip_gen: v7x
topology: tpu7x:2x2x1
jax: 0.10.0
libtpu: 0.0.40
codegen_flags: <defaults>
</compile_context>

<pallas_src>
import functools

import jax
import jax.numpy as jnp
from jax.experimental import pallas as pl
from jax.experimental.pallas import tpu as pltpu

BN_EPS = 1e-5
OUT_LANES = 128      # lane-dense packed output width (x in lanes 0..D-1, logdet in lane D)


def _bn_train(h, gamma, beta):
    """BatchNorm1d (training mode), shifted one-pass stats, ONE sublane reduce.

    d = h - h[0];  mu = h[0] + mean(d);  var = E[d^2] - mean(d)^2  (>= 0 clamp)
    h - mu == d - mean(d), so the normalization never needs mu explicitly.
    The shift keeps |d| ~ spread(h) instead of |h|, avoiding catastrophic
    cancellation in E[.^2] - mean^2 when |mu| >> sigma.
    """
    F = h.shape[-1]
    d = h - h[0:1, :]
    stats = jnp.mean(jnp.concatenate([d, d * d], axis=-1), axis=0, keepdims=True)
    mu_d = stats[:, :F]
    var = jnp.maximum(stats[:, F:] - mu_d * mu_d, 0.0)
    return gamma * (d - mu_d) * jax.lax.rsqrt(var + BN_EPS) + beta


def affine_coupling_kernel(y_ref, slab_ref, out_ref, *, input_dim, hidden_dim):
    D = input_dim
    F1 = 2 * hidden_dim            # fused hidden width  [scale | translation]
    F3 = 2 * D                     # fused layer-3 output width
    V = D + 2 * F1                 # first row of the per-feature vector table

    y = y_ref[...]                                    # (B, D)

    # Packed per-feature parameter table: static ref slices (no extra DMAs).
    b1 = slab_ref[V + 0:V + 1, :]
    g1 = slab_ref[V + 1:V + 2, :]
    be1 = slab_ref[V + 2:V + 3, :]
    b2 = slab_ref[V + 3:V + 4, :]
    g2 = slab_ref[V + 4:V + 5, :]
    be2 = slab_ref[V + 5:V + 6, :]
    b3 = slab_ref[V + 6:V + 7, :F3]
    g3 = slab_ref[V + 7:V + 8, :F3]
    be3 = slab_ref[V + 8:V + 9, :F3]
    mask = slab_ref[V + 9:V + 10, :D]
    omm = slab_ref[V + 10:V + 11, :D]                 # 1 - mask (precomputed host-side)
    scale = slab_ref[V + 11:V + 12, :D]

    ym = y * mask

    # ---- fused layer 1: [scale_fc1 | translation_fc1] + BN + ReLU ----
    h = jnp.dot(ym, slab_ref[0:D, :], preferred_element_type=jnp.float32) + b1
    h = jnp.maximum(_bn_train(h, g1, be1), 0.0)

    # ---- fused layer 2: blockdiag(scale_fc2, translation_fc2) + BN + ReLU ----
    h = jnp.dot(h, slab_ref[D:D + F1, :], preferred_element_type=jnp.float32) + b2
    h = jnp.maximum(_bn_train(h, g2, be2), 0.0)

    # ---- fused layer 3: blockdiag(scale_fc3, translation_fc3) + BN ----
    h = jnp.dot(h, slab_ref[D + F1:D + 2 * F1, :],
                preferred_element_type=jnp.float32)   # (B, F1), cols >= F3 zero-padded
    h = _bn_train(h[:, :F3] + b3, g3, be3)            # (B, 2D)

    s = jnp.maximum(h[:, :D], 0.0) * scale            # scale branch: relu(bn) * scale
    t = h[:, D:F3]                                    # translation branch: bn only
    neg_s = -s

    # ---- coupling (forward of the PyTorch module) ----
    x = mask * y + omm * (y - t) * jnp.exp(neg_s)                 # (B, D)
    ld = jnp.sum(omm * neg_s, axis=-1, keepdims=True)             # (B, 1)

    # Single lane-dense packed output: one full-lane store + tiny overlays,
    # one output DMA (wrapper slices x / logdet apart).
    out_ref[...] = jnp.zeros_like(out_ref)
    out_ref[:, :D] = x
    out_ref[:, D:D + 1] = ld


# ---------------- host-side parameter packing ----------------
def pack_params(p, input_dim, hidden_dim):
    """Pack all 24 parameter tensors into ONE (D + 2*F1 + 12, F1) f32 slab."""
    D, H = input_dim, hidden_dim
    F1, F3 = 2 * H, 2 * D
    zH = jnp.zeros((H, H), jnp.float32)
    zHD = jnp.zeros((H, D), jnp.float32)

    w1 = jnp.concatenate([p["sw1"], p["tw1"]], axis=1)          # (D, F1)
    w2 = jnp.block([[p["sw2"], zH], [zH, p["tw2"]]])            # (F1, F1)
    w3 = jnp.block([[p["sw3"], zHD], [zHD, p["tw3"]]])          # (F1, F3)
    w3 = jnp.pad(w3, ((0, 0), (0, F1 - F3)))                    # pad cols -> (F1, F1)

    def row(v):
        v = jnp.asarray(v, jnp.float32).reshape(1, -1)
        return jnp.pad(v, ((0, 0), (0, F1 - v.shape[1])))

    vec = jnp.concatenate([
        row(jnp.concatenate([p["sb1"], p["tb1"]], axis=1)),
        row(jnp.concatenate([p["sg1"], p["tg1"]], axis=1)),
        row(jnp.concatenate([p["sbe1"], p["tbe1"]], axis=1)),
        row(jnp.concatenate([p["sb2"], p["tb2"]], axis=1)),
        row(jnp.concatenate([p["sg2"], p["tg2"]], axis=1)),
        row(jnp.concatenate([p["sbe2"], p["tbe2"]], axis=1)),
        row(jnp.concatenate([p["sb3"], p["tb3"]], axis=1)),
        row(jnp.concatenate([p["sg3"], p["tg3"]], axis=1)),
        row(jnp.concatenate([p["sbe3"], p["tbe3"]], axis=1)),
        row(p["mask"]),
        row(1.0 - p["mask"]),
        row(p["scale"]),
    ], axis=0)                                                  # (12, F1)

    return jnp.concatenate([w1, w2, w3, vec], axis=0)           # (D + 2*F1 + 12, F1)


def affine_coupling_forward(y, params):
    """y: (B, D) float32. Returns (x: (B, D), logdet: (B,))."""
    B, D = y.shape
    H = params["sw1"].shape[1]
    F1 = 2 * H
    assert H >= D and D % 8 == 0 and F1 % 8 == 0, \
        "packed-slab layout assumes D <= H and 8-row-aligned sections"
    assert D + 1 <= OUT_LANES, "packed output assumes D < 128"

    slab = pack_params(params, D, H)
    kern = functools.partial(affine_coupling_kernel, input_dim=D, hidden_dim=H)
    vmem = pl.BlockSpec(memory_space=pltpu.MemorySpace.VMEM)

    cost = pl.CostEstimate(
        flops=int(2 * B * (D * F1 + 2 * F1 * F1)),
        transcendentals=int(B * D + 2 * F1 + 2 * D),     # exp(-s) + per-BN rsqrt rows
        bytes_accessed=int(4 * (B * D + slab.size + B * OUT_LANES)),
    )

    packed = pl.pallas_call(
        kern,
        out_shape=jax.ShapeDtypeStruct((B, OUT_LANES), jnp.float32),
        in_specs=[vmem, vmem],
        out_specs=vmem,
        cost_estimate=cost,
    )(y, slab)
    return packed[:, :D], packed[:, D]


# ---------------- pure-JAX reference (for verification) ----------------
def _ref_forward(y, p):
    def bn(h, g, b):
        mu = h.mean(0, keepdims=True)
        var = ((h - mu) ** 2).mean(0, keepdims=True)
        return g * (h - mu) / jnp.sqrt(var + BN_EPS) + b

    ym = y * p["mask"]
    h = jnp.maximum(bn(ym @ p["sw1"] + p["sb1"], p["sg1"], p["sbe1"]), 0.0)
    h = jnp.maximum(bn(h @ p["sw2"] + p["sb2"], p["sg2"], p["sbe2"]), 0.0)
    s = jnp.maximum(bn(h @ p["sw3"] + p["sb3"], p["sg3"], p["sbe3"]), 0.0) * p["scale"]

    g = jnp.maximum(bn(ym @ p["tw1"] + p["tb1"], p["tg1"], p["tbe1"]), 0.0)
    g = jnp.maximum(bn(g @ p["tw2"] + p["tb2"], p["tg2"], p["tbe2"]), 0.0)
    t = bn(g @ p["tw3"] + p["tb3"], p["tg3"], p["tbe3"])

    omm = 1.0 - p["mask"]
    x = p["mask"] * y + omm * ((y - t) * jnp.exp(-s))
    logdet = jnp.sum(omm * (-s), axis=-1)
    return x, logdet


# ---------------- deterministic parameter init ----------------
def init_params(key, input_dim, hidden_dim):
    def linear(k, fan_in, fan_out):
        kw, kb = jax.random.split(k)
        bound = 1.0 / jnp.sqrt(jnp.float32(fan_in))
        W = jax.random.uniform(kw, (fan_in, fan_out), jnp.float32, -bound, bound)
        b = jax.random.uniform(kb, (1, fan_out), jnp.float32, -bound, bound)
        return W, b

    keys = jax.random.split(key, 8)
    p = {}
    # alternating binary mask (fixed, non-trainable in the original module)
    p["mask"] = (jnp.arange(input_dim) % 2).astype(jnp.float32).reshape(1, input_dim)
    # scale parameter ~ N(0, 1)  (init.normal_)
    p["scale"] = jax.random.normal(keys[0], (1, input_dim), jnp.float32)

    p["sw1"], p["sb1"] = linear(keys[1], input_dim, hidden_dim)
    p["sw2"], p["sb2"] = linear(keys[2], hidden_dim, hidden_dim)
    p["sw3"], p["sb3"] = linear(keys[3], hidden_dim, input_dim)
    p["tw1"], p["tb1"] = linear(keys[4], input_dim, hidden_dim)
    p["tw2"], p["tb2"] = linear(keys[5], hidden_dim, hidden_dim)
    p["tw3"], p["tb3"] = linear(keys[6], hidden_dim, input_dim)

    # BatchNorm affine params (PyTorch default init: gamma=1, beta=0)
    for g, b, dim in (("sg1", "sbe1", hidden_dim), ("sg2", "sbe2", hidden_dim),
                      ("sg3", "sbe3", input_dim),
                      ("tg1", "tbe1", hidden_dim), ("tg2", "tbe2", hidden_dim),
                      ("tg3", "tbe3", input_dim)):
        p[g] = jnp.ones((1, dim), jnp.float32)
        p[b] = jnp.zeros((1, dim), jnp.float32)
    return p


if __name__ == "__main__":
    B, INPUT_DIM, HIDDEN_DIM = 16, 8, 32   # num_layers is stored but unused in forward

    key = jax.random.PRNGKey(0)
    k_param, k_data = jax.random.split(key)
    params = init_params(k_param, INPUT_DIM, HIDDEN_DIM)
    y = jax.random.normal(k_data, (B, INPUT_DIM), jnp.float32)

    x, logdet = affine_coupling_forward(y, params)
    jax.block_until_ready((x, logdet))

    x_ref, logdet_ref = _ref_forward(y, params)
    assert jnp.allclose(x, x_ref, atol=1e-4, rtol=1e-4), "x mismatch vs reference"
    assert jnp.allclose(logdet, logdet_ref, atol=1e-4, rtol=1e-4), "logdet mismatch"

    print("KERNEL_OK")
</pallas_src>

<mosaic_0001>
module attributes {stable_mosaic.version = 11 : i64} {
  func.func @affine_coupling_kernel(%arg0: memref<16x8xf32, #tpu.memory_space<vmem>>, %arg1: memref<148x64xf32, #tpu.memory_space<vmem>>, %arg2: memref<16x128xf32, #tpu.memory_space<vmem>>) attributes {dimension_semantics = [], scalar_prefetch = 0 : i64, scratch_operands = 0 : i64, tpu.core_type = #tpu.core_type<tc>} {
    %c0 = arith.constant 0 : index
    %c0_0 = arith.constant 0 : index
    %0 = vector.load %arg0[%c0, %c0_0] : memref<16x8xf32, #tpu.memory_space<vmem>>, vector<16x8xf32>
    %c136 = arith.constant 136 : index
    %c0_1 = arith.constant 0 : index
    %1 = vector.load %arg1[%c136, %c0_1] : memref<148x64xf32, #tpu.memory_space<vmem>>, vector<1x64xf32>
    %c137 = arith.constant 137 : index
    %c0_2 = arith.constant 0 : index
    %2 = vector.load %arg1[%c137, %c0_2] : memref<148x64xf32, #tpu.memory_space<vmem>>, vector<1x64xf32>
    %c138 = arith.constant 138 : index
    %c0_3 = arith.constant 0 : index
    %3 = vector.load %arg1[%c138, %c0_3] : memref<148x64xf32, #tpu.memory_space<vmem>>, vector<1x64xf32>
    %c139 = arith.constant 139 : index
    %c0_4 = arith.constant 0 : index
    %4 = vector.load %arg1[%c139, %c0_4] : memref<148x64xf32, #tpu.memory_space<vmem>>, vector<1x64xf32>
    %c140 = arith.constant 140 : index
    %c0_5 = arith.constant 0 : index
    %5 = vector.load %arg1[%c140, %c0_5] : memref<148x64xf32, #tpu.memory_space<vmem>>, vector<1x64xf32>
    %c141 = arith.constant 141 : index
    %c0_6 = arith.constant 0 : index
    %6 = vector.load %arg1[%c141, %c0_6] : memref<148x64xf32, #tpu.memory_space<vmem>>, vector<1x64xf32>
    %c142 = arith.constant 142 : index
    %c0_7 = arith.constant 0 : index
    %7 = vector.load %arg1[%c142, %c0_7] : memref<148x64xf32, #tpu.memory_space<vmem>>, vector<1x16xf32>
    %c143 = arith.constant 143 : index
    %c0_8 = arith.constant 0 : index
    %8 = vector.load %arg1[%c143, %c0_8] : memref<148x64xf32, #tpu.memory_space<vmem>>, vector<1x16xf32>
    %c144 = arith.constant 144 : index
    %c0_9 = arith.constant 0 : index
    %9 = vector.load %arg1[%c144, %c0_9] : memref<148x64xf32, #tpu.memory_space<vmem>>, vector<1x16xf32>
    %c145 = arith.constant 145 : index
    %c0_10 = arith.constant 0 : index
    %10 = vector.load %arg1[%c145, %c0_10] : memref<148x64xf32, #tpu.memory_space<vmem>>, vector<1x8xf32>
    %c146 = arith.constant 146 : index
    %c0_11 = arith.constant 0 : index
    %11 = vector.load %arg1[%c146, %c0_11] : memref<148x64xf32, #tpu.memory_space<vmem>>, vector<1x8xf32>
    %c147 = arith.constant 147 : index
    %c0_12 = arith.constant 0 : index
    %12 = vector.load %arg1[%c147, %c0_12] : memref<148x64xf32, #tpu.memory_space<vmem>>, vector<1x8xf32>
    %13 = vector.broadcast %10 : vector<1x8xf32> to vector<16x8xf32>
    %14 = arith.mulf %0, %13 : vector<16x8xf32>
    %c0_13 = arith.constant 0 : index
    %c0_14 = arith.constant 0 : index
    %15 = vector.load %arg1[%c0_13, %c0_14] : memref<148x64xf32, #tpu.memory_space<vmem>>, vector<8x64xf32>
    %cst = arith.constant dense<0.000000e+00> : vector<16x64xf32>
    %16 = tpu.matmul %14, %15, %cst {dimension_numbers = #tpu.dot_dimension_numbers<[1], [0], [0], [1], [0, 0, 1, 1], [], []>} : vector<16x8xf32>, vector<8x64xf32>, vector<16x64xf32> -> vector<16x64xf32>
    %17 = vector.broadcast %1 : vector<1x64xf32> to vector<16x64xf32>
    %18 = arith.addf %16, %17 : vector<16x64xf32>
    %19 = vector.extract_strided_slice %18 {offsets = [0, 0], sizes = [1, 64], strides = [1, 1]} : vector<16x64xf32> to vector<1x64xf32>
    %20 = vector.broadcast %19 : vector<1x64xf32> to vector<16x64xf32>
    %21 = arith.subf %18, %20 : vector<16x64xf32>
    %22 = arith.mulf %21, %21 : vector<16x64xf32>
    %23 = tpu.concatenate %21, %22 in 1 : vector<16x64xf32>, vector<16x64xf32> -> vector<16x128xf32>
    %cst_15 = arith.constant dense<0.000000e+00> : vector<128xf32>
    %24 = vector.multi_reduction <add>, %23, %cst_15 [0] : vector<16x128xf32> to vector<128xf32>
    %25 = vector.shape_cast %24 : vector<128xf32> to vector<1x128xf32>
    %cst_16 = arith.constant 1.600000e+01 : f32
    %26 = vector.broadcast %cst_16 : f32 to vector<1x128xf32>
    %27 = arith.divf %25, %26 : vector<1x128xf32>
    %28 = vector.extract_strided_slice %27 {offsets = [0, 0], sizes = [1, 64], strides = [1, 1]} : vector<1x128xf32> to vector<1x64xf32>
    %29 = vector.extract_strided_slice %27 {offsets = [0, 64], sizes = [1, 64], strides = [1, 1]} : vector<1x128xf32> to vector<1x64xf32>
    %30 = arith.mulf %28, %28 : vector<1x64xf32>
    %31 = arith.subf %29, %30 : vector<1x64xf32>
    %cst_17 = arith.constant 0.000000e+00 : f32
    %32 = vector.broadcast %cst_17 : f32 to vector<1x64xf32>
    %33 = arith.maximumf %31, %32 : vector<1x64xf32>
    %34 = vector.broadcast %28 : vector<1x64xf32> to vector<16x64xf32>
    %35 = arith.subf %21, %34 : vector<16x64xf32>
    %36 = vector.broadcast %2 : vector<1x64xf32> to vector<16x64xf32>
    %37 = arith.mulf %36, %35 : vector<16x64xf32>
    %cst_18 = arith.constant 9.99999974E-6 : f32
    %38 = vector.broadcast %cst_18 : f32 to vector<1x64xf32>
    %39 = arith.addf %33, %38 : vector<1x64xf32>
    %40 = math.rsqrt %39 : vector<1x64xf32>
    %41 = vector.broadcast %40 : vector<1x64xf32> to vector<16x64xf32>
    %42 = arith.mulf %37, %41 : vector<16x64xf32>
    %43 = vector.broadcast %3 : vector<1x64xf32> to vector<16x64xf32>
    %44 = arith.addf %42, %43 : vector<16x64xf32>
    %cst_19 = arith.constant 0.000000e+00 : f32
    %45 = vector.broadcast %cst_19 : f32 to vector<16x64xf32>
    %46 = arith.maximumf %44, %45 : vector<16x64xf32>
    %c8 = arith.constant 8 : index
    %c0_20 = arith.constant 0 : index
    %47 = vector.load %arg1[%c8, %c0_20] : memref<148x64xf32, #tpu.memory_space<vmem>>, vector<64x64xf32>
    %cst_21 = arith.constant dense<0.000000e+00> : vector<16x64xf32>
    %48 = tpu.matmul %46, %47, %cst_21 {dimension_numbers = #tpu.dot_dimension_numbers<[1], [0], [0], [1], [0, 0, 1, 1], [], []>} : vector<16x64xf32>, vector<64x64xf32>, vector<16x64xf32> -> vector<16x64xf32>
    %49 = vector.broadcast %4 : vector<1x64xf32> to vector<16x64xf32>
    %50 = arith.addf %48, %49 : vector<16x64xf32>
    %51 = vector.extract_strided_slice %50 {offsets = [0, 0], sizes = [1, 64], strides = [1, 1]} : vector<16x64xf32> to vector<1x64xf32>
    %52 = vector.broadcast %51 : vector<1x64xf32> to vector<16x64xf32>
    %53 = arith.subf %50, %52 : vector<16x64xf32>
    %54 = arith.mulf %53, %53 : vector<16x64xf32>
    %55 = tpu.concatenate %53, %54 in 1 : vector<16x64xf32>, vector<16x64xf32> -> vector<16x128xf32>
    %cst_22 = arith.constant dense<0.000000e+00> : vector<128xf32>
    %56 = vector.multi_reduction <add>, %55, %cst_22 [0] : vector<16x128xf32> to vector<128xf32>
    %57 = vector.shape_cast %56 : vector<128xf32> to vector<1x128xf32>
    %cst_23 = arith.constant 1.600000e+01 : f32
    %58 = vector.broadcast %cst_23 : f32 to vector<1x128xf32>
    %59 = arith.divf %57, %58 : vector<1x128xf32>
    %60 = vector.extract_strided_slice %59 {offsets = [0, 0], sizes = [1, 64], strides = [1, 1]} : vector<1x128xf32> to vector<1x64xf32>
    %61 = vector.extract_strided_slice %59 {offsets = [0, 64], sizes = [1, 64], strides = [1, 1]} : vector<1x128xf32> to vector<1x64xf32>
    %62 = arith.mulf %60, %60 : vector<1x64xf32>
    %63 = arith.subf %61, %62 : vector<1x64xf32>
    %cst_24 = arith.constant 0.000000e+00 : f32
    %64 = vector.broadcast %cst_24 : f32 to vector<1x64xf32>
    %65 = arith.maximumf %63, %64 : vector<1x64xf32>
    %66 = vector.broadcast %60 : vector<1x64xf32> to vector<16x64xf32>
    %67 = arith.subf %53, %66 : vector<16x64xf32>
    %68 = vector.broadcast %5 : vector<1x64xf32> to vector<16x64xf32>
    %69 = arith.mulf %68, %67 : vector<16x64xf32>
    %cst_25 = arith.constant 9.99999974E-6 : f32
    %70 = vector.broadcast %cst_25 : f32 to vector<1x64xf32>
    %71 = arith.addf %65, %70 : vector<1x64xf32>
    %72 = math.rsqrt %71 : vector<1x64xf32>
    %73 = vector.broadcast %72 : vector<1x64xf32> to vector<16x64xf32>
    %74 = arith.mulf %69, %73 : vector<16x64xf32>
    %75 = vector.broadcast %6 : vector<1x64xf32> to vector<16x64xf32>
    %76 = arith.addf %74, %75 : vector<16x64xf32>
    %cst_26 = arith.constant 0.000000e+00 : f32
    %77 = vector.broadcast %cst_26 : f32 to vector<16x64xf32>
    %78 = arith.maximumf %76, %77 : vector<16x64xf32>
    %c72 = arith.constant 72 : index
    %c0_27 = arith.constant 0 : index
    %79 = vector.load %arg1[%c72, %c0_27] : memref<148x64xf32, #tpu.memory_space<vmem>>, vector<64x64xf32>
    %cst_28 = arith.constant dense<0.000000e+00> : vector<16x64xf32>
    %80 = tpu.matmul %78, %79, %cst_28 {dimension_numbers = #tpu.dot_dimension_numbers<[1], [0], [0], [1], [0, 0, 1, 1], [], []>} : vector<16x64xf32>, vector<64x64xf32>, vector<16x64xf32> -> vector<16x64xf32>
    %81 = vector.extract_strided_slice %80 {offsets = [0, 0], sizes = [16, 16], strides = [1, 1]} : vector<16x64xf32> to vector<16x16xf32>
    %82 = vector.broadcast %7 : vector<1x16xf32> to vector<16x16xf32>
    %83 = arith.addf %81, %82 : vector<16x16xf32>
    %84 = vector.extract_strided_slice %83 {offsets = [0, 0], sizes = [1, 16], strides = [1, 1]} : vector<16x16xf32> to vector<1x16xf32>
    %85 = vector.broadcast %84 : vector<1x16xf32> to vector<16x16xf32>
    %86 = arith.subf %83, %85 : vector<16x16xf32>
    %87 = arith.mulf %86, %86 : vector<16x16xf32>
    %88 = tpu.concatenate %86, %87 in 1 : vector<16x16xf32>, vector<16x16xf32> -> vector<16x32xf32>
    %cst_29 = arith.constant dense<0.000000e+00> : vector<32xf32>
    %89 = vector.multi_reduction <add>, %88, %cst_29 [0] : vector<16x32xf32> to vector<32xf32>
    %90 = vector.shape_cast %89 : vector<32xf32> to vector<1x32xf32>
    %cst_30 = arith.constant 1.600000e+01 : f32
    %91 = vector.broadcast %cst_30 : f32 to vector<1x32xf32>
    %92 = arith.divf %90, %91 : vector<1x32xf32>
    %93 = vector.extract_strided_slice %92 {offsets = [0, 0], sizes = [1, 16], strides = [1, 1]} : vector<1x32xf32> to vector<1x16xf32>
    %94 = vector.extract_strided_slice %92 {offsets = [0, 16], sizes = [1, 16], strides = [1, 1]} : vector<1x32xf32> to vector<1x16xf32>
    %95 = arith.mulf %93, %93 : vector<1x16xf32>
    %96 = arith.subf %94, %95 : vector<1x16xf32>
    %cst_31 = arith.constant 0.000000e+00 : f32
    %97 = vector.broadcast %cst_31 : f32 to vector<1x16xf32>
    %98 = arith.maximumf %96, %97 : vector<1x16xf32>
    %99 = vector.broadcast %93 : vector<1x16xf32> to vector<16x16xf32>
    %100 = arith.subf %86, %99 : vector<16x16xf32>
    %101 = vector.broadcast %8 : vector<1x16xf32> to vector<16x16xf32>
    %102 = arith.mulf %101, %100 : vector<16x16xf32>
    %cst_32 = arith.constant 9.99999974E-6 : f32
    %103 = vector.broadcast %cst_32 : f32 to vector<1x16xf32>
    %104 = arith.addf %98, %103 : vector<1x16xf32>
    %105 = math.rsqrt %104 : vector<1x16xf32>
    %106 = vector.broadcast %105 : vector<1x16xf32> to vector<16x16xf32>
    %107 = arith.mulf %102, %106 : vector<16x16xf32>
    %108 = vector.broadcast %9 : vector<1x16xf32> to vector<16x16xf32>
    %109 = arith.addf %107, %108 : vector<16x16xf32>
    %110 = vector.extract_strided_slice %109 {offsets = [0, 0], sizes = [16, 8], strides = [1, 1]} : vector<16x16xf32> to vector<16x8xf32>
    %cst_33 = arith.constant 0.000000e+00 : f32
    %111 = vector.broadcast %cst_33 : f32 to vector<16x8xf32>
    %112 = arith.maximumf %110, %111 : vector<16x8xf32>
    %113 = vector.broadcast %12 : vector<1x8xf32> to vector<16x8xf32>
    %114 = arith.mulf %112, %113 : vector<16x8xf32>
    %115 = vector.extract_strided_slice %109 {offsets = [0, 8], sizes = [16, 8], strides = [1, 1]} : vector<16x16xf32> to vector<16x8xf32>
    %cst_34 = arith.constant 0.000000e+00 : f32
    %116 = vector.broadcast %cst_34 : f32 to vector<16x8xf32>
    %117 = arith.subf %116, %114 : vector<16x8xf32>
    %118 = vector.broadcast %10 : vector<1x8xf32> to vector<16x8xf32>
    %119 = arith.mulf %118, %0 : vector<16x8xf32>
    %120 = arith.subf %0, %115 : vector<16x8xf32>
    %121 = vector.broadcast %11 : vector<1x8xf32> to vector<16x8xf32>
    %122 = arith.mulf %121, %120 : vector<16x8xf32>
    %123 = math.exp %117 : vector<16x8xf32>
    %124 = arith.mulf %122, %123 : vector<16x8xf32>
    %125 = arith.addf %119, %124 : vector<16x8xf32>
    %126 = vector.broadcast %11 : vector<1x8xf32> to vector<16x8xf32>
    %127 = arith.mulf %126, %117 : vector<16x8xf32>
    %cst_35 = arith.constant dense<0.000000e+00> : vector<16xf32>
    %128 = vector.multi_reduction <add>, %127, %cst_35 [1] : vector<16x8xf32> to vector<16xf32>
    %129 = vector.shape_cast %128 : vector<16xf32> to vector<16x1xf32>
    %cst_36 = arith.constant 0.000000e+00 : f32
    %130 = vector.broadcast %cst_36 : f32 to vector<16x128xf32>
    %c0_37 = arith.constant 0 : index
    %c0_38 = arith.constant 0 : index
    %131 = vector.load %arg2[%c0_37, %c0_38] : memref<16x128xf32, #tpu.memory_space<vmem>>, vector<16x128xf32>
    tpu.vector_store %arg2[%c0_37, %c0_38], %130 {strides = array<i32>} : memref<16x128xf32, #tpu.memory_space<vmem>>, vector<16x128xf32>,
    %c0_39 = arith.constant 0 : index
    %c0_40 = arith.constant 0 : index
    %132 = vector.load %arg2[%c0_39, %c0_40] : memref<16x128xf32, #tpu.memory_space<vmem>>, vector<16x8xf32>
    tpu.vector_store %arg2[%c0_39, %c0_40], %125 {strides = array<i32>} : memref<16x128xf32, #tpu.memory_space<vmem>>, vector<16x8xf32>,
    %c0_41 = arith.constant 0 : index
    %c8_42 = arith.constant 8 : index
    %133 = vector.load %arg2[%c0_41, %c8_42] : memref<16x128xf32, #tpu.memory_space<vmem>>, vector<16x1xf32>
    tpu.vector_store %arg2[%c0_41, %c8_42], %129 {strides = array<i32>} : memref<16x128xf32, #tpu.memory_space<vmem>>, vector<16x1xf32>,
    return
  }
}

</mosaic_0001>

<bundles_post_ra>
// kernel: tpu_custom_call.1
= control target key start
LH: loop header
LB: loop body
LE: loop exit
PB: predicated region body
PF: predicated region fallthrough
CT: control target
= control target key end

     0   :  { %vm37_vm0 = vcmask 64512   ;;  %s891_s0 = inlined_call_operand.vmem [shape: f32[16,8], index: 0, kind: input, shape index: {}]   ;;  %s892_s1 = inlined_call_operand.vmem [shape: f32[148,64], index: 1, kind: input, shape index: {}]   ;;  %s893_s2 = inlined_call_operand.hbm [shape: f32[16,128], index: 2, kind: output, shape index: {}]  }
   0x1   :  { %v32_v0 = vld [vmem:[%s892_s1] sm:$0xff]  ;;  %v751_v2 = vld [vmem:[%s891_s0 + $0x8] sm:$0xff]  ;;  %v559_v3 = vld [vmem:[%s892_s1 + $0x91] ss:$0 sm:$0xff] }
   0x2   :  { %v746_v1 = vld [vmem:[%s891_s0] sm:$0xff]  ;;  %600 = vmatprep.subr.mxu0 %v32_v0 }
   0x3   :  { %7 = vsyncpa [#allocation3], 0  ;;  %601 = vmatpush3.msra.mxu0 %v32_v0  ;;  %v757_v4 = vmul.f32 %v559_v3, %v746_v1  ;;  %v760_v5 = vmul.f32 %v559_v3, %v751_v2  ;;  %v119_v6 = vlaneseq  ;;  %v560_v8 = vld [vmem:[%s892_s1 + $0x88] ss:$0 sm:$0xff]  ;;  %s717_s18 = smov 64   ;;  %vm135_vm1 = vcmask 523264  }
   0x4   :  { %v182_v32 = vld [vmem:[%s892_s1 + $0x8] sm:$0xff]  ;;  %v183_v33 = vld [vmem:[%s892_s1 + $0x10] sm:$0xff]  ;;  %v184_v34 = vld [vmem:[%s892_s1 + $0x18] sm:$0xff]  ;;  %s718_s6 = smov 16   ;;  %vm447_vm2 = vcmask 130048   ;;  %vm450_vm3 = vcmask 261120  }
   0x5   :  { %602 = vmatprep.mubr.msk.f32.mxu0 %vm37_vm0, %v757_v4  ;;  %v120_v7 = vshrl.u32 %v119_v6, 7  ;;  %v643_v35 = vpack.c.bf16 %v183_v33, %v182_v32  ;;  %v185_v36 = vld [vmem:[%s892_s1 + $0x20] sm:$0xff]  ;;  %v186_v38 = vld [vmem:[%s892_s1 + $0x28] sm:$0xff]  ;;  %v187_v39 = vld [vmem:[%s892_s1 + $0x30] sm:$0xff]  ;;  %s719_s7 = smov 112   ;;  %s720_s16 = smov 120  }
   0x6   :  { %603 = vmatmul.mubr.msk.f32.vlgmr.msra.gmra.mrb[0].mxu0 %vm37_vm0, %v760_v5  ;;  %v647_v37 = vpack.c.bf16 %v185_v36, %v184_v34  ;;  %v651_v40 = vpack.c.bf16 %v187_v39, %v186_v38  ;;  %v188_v45 = vld [vmem:[%s892_s1 + $0x38] sm:$0xff]  ;;  %v189_v46 = vld [vmem:[%s892_s1 + $0x40] sm:$0xff]  ;;  %v563_v52 = vld [vmem:[%s892_s1 + $0x89] ss:$0 sm:$0xff]  ;;  %vm540_vm4 = vcmask 72768  }
   0x7   :  { %v769_v10 = vsub.s32 0, %v120_v7  ;;  %644 = vmatprep.subr.bf16.mxu1 %v643_v35  ;;  %v655_v47 = vpack.c.bf16 %v189_v46, %v188_v45  ;;  %v564_v56 = vld [vmem:[%s892_s1 + $0x8a] ss:$0 sm:$0xff]  ;;  %v565_v63 = vld [vmem:[%s892_s1 + $0x8b] ss:$0 sm:$0xff]  ;;  %v341_v34 = vld [vmem:[%s892_s1 + $0x70] sm:$0xff] }
   0x8   :  { %646 = vmatpush3.bf16.msra.mxu1 %v643_v35  ;;  %v340_v33 = vld [vmem:[%s892_s1 + $0x68] sm:$0xff] }
   0x9   :  { %648 = vmatprep.subr.bf16.mxu1 %v647_v37  ;;  %v667_v35 = vpack.c.bf16 %v341_v34, %v340_v33 }
   0xc   :  { %650 = vmatpush3.bf16.msra.mxu1 %v647_v37 }
   0xd   :  { %652 = vmatprep.subr.bf16.mxu1 %v651_v40 }
  0x10   :  { %654 = vmatpush3.bf16.msra.mxu1 %v651_v40  ;;  %v342_v40 = vld [vmem:[%s892_s1 + $0x78] sm:$0xff] }
  0x11   :  { %656 = vmatprep.subr.bf16.mxu1 %v655_v47 }
  0x14   :  { %658 = vmatpush3.bf16.msra.mxu1 %v655_v47  ;;  %v568_v47 = vld [vmem:[%s892_s1 + $0x8c] ss:$0 sm:$0xff] }
  0xd9   :  { %v604_v9 = vpop.f32.mrb[0].mxu0 }
  0xda   :  { %v110_v11 = vpop.f32.mrb[1].mxu0  ;;  %v116_v13 = vadd.f32 %v604_v9, %v560_v8 }
  0xdb   :  { %v111_v12 = vadd.f32 %v560_v8, %v110_v11 }
  0xdd   :  { %v122_v14 = vrot.slane %v111_v12, %v769_v10 }
  0xdf   :  { %v123_v15 = vsub.f32 %v111_v12, %v122_v14  ;;  %v124_v16 = vsub.f32 %v116_v13, %v122_v14 }
  0xe1   :  { %v125_v17 = vmul.f32 %v123_v15, %v123_v15  ;;  %v126_v18 = vmul.f32 %v124_v16, %v124_v16 }
  0xe3   :  { %129 = vrot.lane.b32.xlu0 %v125_v17, %s717_s18 }
  0xe7   :  { %131 = vrot.lane.b32.xlu0 %v126_v18, %s717_s18 }
 0x155   :  { %v130_v19 = vpop.permute.xlu0 %129 }
 0x156   :  { %v136_v21 = vsel %vm135_vm1, %v123_v15, %v130_v19 }
 0x159   :  { %v132_v20 = vpop.permute.xlu0 %131 }
 0x15a   :  { %v137_v22 = vsel %vm135_vm1, %v124_v16, %v132_v20 }
 0x15b   :  { %v138_v23 = vadd.f32 %v137_v22, %v136_v21 }
 0x15d   :  { %v139_v24 = vrot.slane %v138_v23, 4 }
 0x15f   :  { %v140_v25 = vadd.f32 %v139_v24, %v138_v23 }
 0x161   :  { %v141_v26 = vrot.slane %v140_v25, 2 }
 0x163   :  { %v142_v27 = vadd.f32 %v141_v26, %v140_v25 }
 0x165   :  { %v143_v28 = vrot.slane %v142_v27, 1 }
 0x167   :  { %v144_v29 = vadd.f32 %v143_v28, %v142_v27  ;;  %v336_v27 = vld [vmem:[%s892_s1 + $0x48] sm:$0xff]  ;;  %v337_v28 = vld [vmem:[%s892_s1 + $0x50] sm:$0xff] }
 0x169   :  { %v146_v30 = vmul.f32 0.0625, %v144_v29  ;;  %v338_v29 = vld [vmem:[%s892_s1 + $0x58] sm:$0xff] }
 0x16b   :  { %v147_v31 = vmul.f32 %v146_v30, %v146_v30  ;;  %v154_v50 = vsub.f32 %v123_v15, %v146_v30  ;;  %v155_v51 = vsub.f32 %v124_v16, %v146_v30 }
 0x16d   :  { %149 = vrot.lane.b32.xlu1 %v147_v31, %s717_s18  ;;  %v160_v53 = vmul.f32 %v563_v52, %v154_v50  ;;  %v161_v54 = vmul.f32 %v563_v52, %v155_v51  ;;  %v339_v31 = vld [vmem:[%s892_s1 + $0x60] sm:$0xff]  ;;  %v569_v50 = vld [vmem:[%s892_s1 + $0x8d] ss:$0 sm:$0xff] }
 0x16e   :  { %v663_v32 = vpack.c.bf16 %v339_v31, %v338_v29 }
 0x1df   :  { %v150_v41 = vpop.permute.xlu1 %149 }
 0x1e0   :  { %v152_v42 = vsub.f32 %v146_v30, %v150_v41  ;;  %v659_v30 = vpack.c.bf16 %v337_v28, %v336_v27  ;;  %v343_v41 = vld [vmem:[%s892_s1 + $0x80] sm:$0xff] }
 0x1e2   :  { %v153_v43 = vmax.f32 %v152_v42, 0.0  ;;  %660 = vmatprep.subr.bf16.mxu0 %v659_v30  ;;  %v671_v42 = vpack.c.bf16 %v343_v41, %v342_v40 }
 0x1e3   :  { %662 = vmatpush3.bf16.msra.mxu0 %v659_v30 }
 0x1e4   :  { %v162_v44 = vadd.f32 1e-05, %v153_v43  ;;  %664 = vmatprep.subr.bf16.mxu0 %v663_v32 }
 0x1e6   :  { %683 = vrsqrt.f32 %v162_v44 }
 0x1e7   :  { %666 = vmatpush3.bf16.msra.mxu0 %v663_v32  ;;  %v573_v32 = vld [vmem:[%s892_s1 + $0x8f] ss:$0 sm:$0xff] }
 0x1e8   :  { %668 = vmatprep.subr.bf16.mxu0 %v667_v35 }
 0x1eb   :  { %670 = vmatpush3.bf16.msra.mxu0 %v667_v35  ;;  %v574_v35 = vld [vmem:[%s892_s1 + $0x90] ss:$0 sm:$0xff] }
 0x1ec   :  { %672 = vmatprep.subr.bf16.mxu0 %v671_v42 }
 0x1ef   :  { %674 = vmatpush3.bf16.msra.mxu0 %v671_v42 }
 0x1f0   :  { %v684_v48 = vpop.eup %683 }
 0x1f1   :  { %v167_v49 = vrot.slane %v684_v48, %v769_v10 }
 0x1f3   :  { %169 = vrot.lane.b32.xlu1 %v167_v49, %s717_s18 }
 0x265   :  { %v170_v55 = vpop.permute.xlu1 %169 }
 0x266   :  { %v172_v57 = vmul.f32 %v170_v55, %v160_v53  ;;  %v173_v58 = vmul.f32 %v170_v55, %v161_v54 }
 0x268   :  { %v178_v59 = vadd.f32 %v564_v56, %v172_v57  ;;  %v179_v60 = vadd.f32 %v564_v56, %v173_v58  ;;  %v572_v58 = vld [vmem:[%s892_s1 + $0x8e] ss:$0 sm:$0xff] }
 0x26a   :  { %v180_v61 = vmax.f32 %v178_v59, 0.0  ;;  %v181_v62 = vmax.f32 %v179_v60, 0.0 }
 0x26c   :  { %621 = vmatprep.mubr.msk.f32.mxu1 %vm135_vm1, %v180_v61 }
 0x26d   :  { %622 = vmatmul.mubr.msk.f32.vlgmr.msra.gmra.mrb[0].mxu1 %vm135_vm1, %v181_v62 }
 0x340   :  { %v623_v0 = vpop.f32.mrb[0].mxu1 }
 0x341   :  { %v266_v3 = vpop.f32.mrb[1].mxu1  ;;  %v272_v7 = vadd.f32 %v623_v0, %v565_v63 }
 0x342   :  { %v267_v6 = vadd.f32 %v565_v63, %v266_v3 }
 0x344   :  { %v278_v8 = vrot.slane %v267_v6, %v769_v10 }
 0x346   :  { %v279_v9 = vsub.f32 %v267_v6, %v278_v8  ;;  %v280_v11 = vsub.f32 %v272_v7, %v278_v8 }
 0x348   :  { %v282_v12 = vmul.f32 %v280_v11, %v280_v11  ;;  %v281_v13 = vmul.f32 %v279_v9, %v279_v9 }
 0x34a   :  { %287 = vrot.lane.b32.xlu1 %v282_v12, %s717_s18  ;;  %285 = vrot.lane.b32.xlu0 %v281_v13, %s717_s18 }
 0x3bc   :  { %v288_v14 = vpop.permute.xlu1 %287  ;;  %v286_v15 = vpop.permute.xlu0 %285 }
 0x3bd   :  { %v292_v16 = vsel %vm135_vm1, %v280_v11, %v288_v14  ;;  %v291_v17 = vsel %vm135_vm1, %v279_v9, %v286_v15 }
 0x3be   :  { %v293_v18 = vadd.f32 %v292_v16, %v291_v17 }
 0x3c0   :  { %v294_v19 = vrot.slane %v293_v18, 4 }
 0x3c2   :  { %v295_v20 = vadd.f32 %v294_v19, %v293_v18 }
 0x3c4   :  { %v296_v21 = vrot.slane %v295_v20, 2 }
 0x3c6   :  { %v297_v22 = vadd.f32 %v296_v21, %v295_v20 }
 0x3c8   :  { %v298_v23 = vrot.slane %v297_v22, 1 }
 0x3ca   :  { %v299_v24 = vadd.f32 %v298_v23, %v297_v22 }
 0x3cc   :  { %v300_v25 = vmul.f32 0.0625, %v299_v24 }
 0x3ce   :  { %v301_v26 = vmul.f32 %v300_v25, %v300_v25  ;;  %v308_v45 = vsub.f32 %v279_v9, %v300_v25  ;;  %v309_v46 = vsub.f32 %v280_v11, %v300_v25 }
 0x3d0   :  { %303 = vrot.lane.b32.xlu0 %v301_v26, %s717_s18  ;;  %v314_v48 = vmul.f32 %v568_v47, %v308_v45  ;;  %v315_v49 = vmul.f32 %v568_v47, %v309_v46  ;;  %v576_v45 = vld [vmem:[%s892_s1 + $0x92] ss:$0 sm:$0xff] }
 0x442   :  { %v304_v36 = vpop.permute.xlu0 %303 }
 0x443   :  { %v306_v37 = vsub.f32 %v300_v25, %v304_v36 }
 0x445   :  { %v307_v38 = vmax.f32 %v306_v37, 0.0 }
 0x447   :  { %v316_v39 = vadd.f32 1e-05, %v307_v38 }
 0x449   :  { %685 = vrsqrt.f32 %v316_v39 }
 0x453   :  { %v686_v43 = vpop.eup %685 }
 0x454   :  { %v321_v44 = vrot.slane %v686_v43, %v769_v10 }
 0x456   :  { %323 = vrot.lane.b32.xlu1 %v321_v44, %s717_s18 }
 0x4c8   :  { %v324_v51 = vpop.permute.xlu1 %323 }
 0x4c9   :  { %v326_v52 = vmul.f32 %v324_v51, %v314_v48  ;;  %v327_v53 = vmul.f32 %v324_v51, %v315_v49 }
 0x4cb   :  { %v332_v54 = vadd.f32 %v569_v50, %v326_v52  ;;  %v333_v55 = vadd.f32 %v569_v50, %v327_v53  ;;  %v721_v52 = vmov 0.0  }
 0x4cc   :  { %536 = vst [vmem:[#allocation2] sm:$0xff] %v721_v52  ;;  %537 = vst [vmem:[#allocation2 + $0x8] sm:$0xff] %v721_v52 }
 0x4cd   :  { %v334_v56 = vmax.f32 %v332_v54, 0.0  ;;  %v335_v57 = vmax.f32 %v333_v55, 0.0 }
 0x4cf   :  { %640 = vmatprep.mubr.msk.f32.mxu0 %vm135_vm1, %v334_v56 }
 0x4d0   :  { %641 = vmatmul.mubr.msk.f32.vlgmr.msra.gmra.mrb[2].mxu0 %vm135_vm1, %v335_v57 }
 0x5a3   :  { %v642_v59 = vpop.f32.mrb[2].mxu0 }
 0x5a4   :  { %v416_v60 = vpop.f32.mrb[3].mxu0  ;;  %v430_v62 = vadd.f32 %v642_v59, %v572_v58 }
 0x5a5   :  { %v429_v61 = vadd.f32 %v572_v58, %v416_v60 }
 0x5a7   :  { %v434_v63 = vrot.slane %v429_v61, %v769_v10 }
 0x5a9   :  { %v435_v0 = vsub.f32 %v429_v61, %v434_v63  ;;  %v436_v3 = vsub.f32 %v430_v62, %v434_v63 }
 0x5ab   :  { %v438_v6 = vmul.f32 %v436_v3, %v436_v3  ;;  %v437_v7 = vmul.f32 %v435_v0, %v435_v0 }
 0x5ad   :  { %443 = vrot.lane.b32.xlu1 %v438_v6, %s718_s6  ;;  %441 = vrot.lane.b32.xlu0 %v437_v7, %s718_s6 }
 0x61f   :  { %v444_v8 = vpop.permute.xlu1 %443  ;;  %v442_v9 = vpop.permute.xlu0 %441 }
 0x620   :  { %v449_v11 = vsel %vm447_vm2, %v436_v3, %v444_v8  ;;  %v448_v12 = vsel %vm447_vm2, %v435_v0, %v442_v9 }
 0x621   :  { %v452_v13 = vsel %vm450_vm3, %v449_v11, 0.0  ;;  %v451_v14 = vsel %vm450_vm3, %v448_v12, 0.0 }
 0x622   :  { %v453_v15 = vadd.f32 %v452_v13, %v451_v14 }
 0x624   :  { %v454_v16 = vrot.slane %v453_v15, 4 }
 0x626   :  { %v455_v17 = vadd.f32 %v454_v16, %v453_v15 }
 0x628   :  { %v456_v18 = vrot.slane %v455_v17, 2 }
 0x62a   :  { %v457_v19 = vadd.f32 %v456_v18, %v455_v17 }
 0x62c   :  { %v458_v20 = vrot.slane %v457_v19, 1 }
 0x62e   :  { %v459_v21 = vadd.f32 %v458_v20, %v457_v19 }
 0x630   :  { %v460_v22 = vmul.f32 0.0625, %v459_v21 }
 0x632   :  { %v461_v23 = vmul.f32 %v460_v22, %v460_v22  ;;  %v468_v30 = vsub.f32 %v435_v0, %v460_v22  ;;  %v469_v31 = vsub.f32 %v436_v3, %v460_v22 }
 0x634   :  { %463 = vrot.lane.b32.xlu0 %v461_v23, %s718_s6  ;;  %v474_v33 = vmul.f32 %v573_v32, %v468_v30  ;;  %v475_v34 = vmul.f32 %v573_v32, %v469_v31 }
 0x6a6   :  { %v464_v24 = vpop.permute.xlu0 %463 }
 0x6a7   :  { %v466_v25 = vsub.f32 %v460_v22, %v464_v24 }
 0x6a9   :  { %v467_v26 = vmax.f32 %v466_v25, 0.0 }
 0x6ab   :  { %v476_v27 = vadd.f32 1e-05, %v467_v26 }
 0x6ad   :  { %687 = vrsqrt.f32 %v476_v27 }
 0x6b7   :  { %v688_v28 = vpop.eup %687 }
 0x6b8   :  { %v481_v29 = vrot.slane %v688_v28, %v769_v10  ;;  %v575_v10 = vld [vmem:[%s892_s1 + $0x93] ss:$0 sm:$0xff]  ;;  %s722_s1 = smov [#allocation2]  }
 0x6b9   :  { %s548_s0 = sshll.u32 %s722_s1, 4  ;;  %s549_s0 = int_to_ptr.vmem [resolvable:$true] %s548_s0 }
 0x6ba   :  { %483 = vrot.lane.b32.xlu1 %v481_v29, %s719_s7  ;;  %s693_s17 = scalar_lea.vmem %s549_s0, 256  ;;  %p698_p1 = scmp.lt.s32.totalorder %s549_s0, %s549_s0 }
 0x6bb   :  { %p694_p0 = scmp.ne.s32.totalorder %s549_s0, %s693_s17  ;;  %p699_p2 = scmp.lt.s32.totalorder %s693_s17, %s693_s17 }
 0x6bd   :  { %p700_p3 = por %p699_p2, %p698_p1 }
 0x6bf   :  { %p701_p4 = pnand %p700_p3, %p694_p0 }
 0x72c   :  { %v484_v36 = vpop.permute.xlu1 %483 }
 0x72d   :  { %v486_v37 = vmul.f32 %v484_v36, %v474_v33  ;;  %v487_v38 = vmul.f32 %v484_v36, %v475_v34 }
 0x72f   :  { %v492_v39 = vadd.f32 %v574_v35, %v486_v37  ;;  %v493_v40 = vadd.f32 %v574_v35, %v487_v38 }
 0x731   :  { %v494_v41 = vmax.f32 %v492_v39, 0.0  ;;  %v495_v42 = vmax.f32 %v493_v40, 0.0 }
 0x733   :  { %v501_v43 = vmul.f32 %v575_v10, %v495_v42  ;;  %v500_v44 = vmul.f32 %v575_v10, %v494_v41 }
 0x735   :  { %v503_v46 = vsub.f32 0.0, %v501_v43  ;;  %v502_v47 = vsub.f32 0.0, %v500_v44 }
 0x737   :  { %v529_v48 = vmul.f32 %v576_v45, %v503_v46  ;;  %v528_v49 = vmul.f32 %v576_v45, %v502_v47  ;;  %v522_v53 = vmul.f32 1.442695, %v503_v46  ;;  %v520_v54 = vmul.f32 1.442695, %v502_v47 }
 0x739   :  { %v533_v50 = vsel %vm37_vm0, %v529_v48, 0.0  ;;  %v530_v51 = vsel %vm37_vm0, %v528_v49, 0.0  ;;  %689 = vpow2.f32 %v522_v53 }
 0x73a   :  { %534 = vadd.xlane.f32.xlu1 %v533_v50  ;;  %531 = vadd.xlane.f32.xlu0 %v530_v51  ;;  %691 = vpow2.f32 %v520_v54 }
 0x743   :  { %v690_v61 = vpop.eup %689 }
 0x744   :  { %v692_v0 = vpop.eup %691 }
 0x74b   :  { %508 = vrot.lane.b32.xlu1 %v493_v40, %s720_s16 }
 0x750   :  { %506 = vrot.lane.b32.xlu0 %v492_v39, %s720_s16 }
 0x7c7   :  { %v535_v55 = vpop.xlane.xlu1 %534  ;;  %v532_v56 = vpop.xlane.xlu0 %531 }
 0x7cb   :  { %v509_v57 = vpop.permute.xlu1 %508  ;;  %v507_v58 = vpop.permute.xlu0 %506 }
 0x7cc   :  { %v513_v59 = vsub.f32 %v751_v2, %v509_v57  ;;  %v512_v60 = vsub.f32 %v746_v1, %v507_v58 }
 0x7ce   :  { %v519_v62 = vmul.f32 %v576_v45, %v513_v59  ;;  %v518_v63 = vmul.f32 %v576_v45, %v512_v60 }
 0x7d0   :  { %v525_v3 = vmul.f32 %v690_v61, %v519_v62  ;;  %v524_v6 = vmul.f32 %v692_v0, %v518_v63 }
 0x7d2   :  { %v527_v7 = vadd.f32 %v525_v3, %v760_v5  ;;  %v526_v8 = vadd.f32 %v524_v6, %v757_v4 }
 0x7d4   :  { %538 = vst.msk [vmem:[#allocation2] sm:$0xff] %vm37_vm0, %v526_v8  ;;  %539 = vst.msk [vmem:[#allocation2 + $0x8] sm:$0xff] %vm37_vm0, %v527_v7 }
 0x7d5   :  { %541 = vst.msk [vmem:[#allocation2] sm:$0xff] %vm540_vm4, %v532_v56  ;;  %542 = vst.msk [vmem:[#allocation2 + $0x8] sm:$0xff] %vm540_vm4, %v535_v55 }
 0x7d6   :  { %704 = shalt.err (!%p701_p4)
}
 0x7d7   :  { %s705_s21 = scalar_lea.hbm %s893_s2, 256 }
 0x7d8   :  { %p706_p5 = scmp.ne.s32.totalorder %s893_s2, %s705_s21  ;;  %p709_p6 = scmp.lt.u32.totalorder %s705_s21, %s893_s2 }
 0x7da   :  { %p711_p7 = pnand %p709_p6, %p706_p5 }
 0x7dc   :  { %714 = shalt.err (!%p711_p7)
}
 0x7dd   :  { %s723_s26 = smov 128   ;;  %s724_s27 = smov 8  }
 0x7de   :  { %554 = dma.vmem_to_hbm [thread:$0]  %s549_s0, 256, %s893_s2, [#allocation3], %s723_s26, %s723_s26, %s724_s27  }
 0x7df   :  { %715 = dma.done.wait [#allocation3], 256  }
 0x7e0   :  { %716 = vsyncadd [#allocation3], 4294967040 }
 0x7e1   :  { %558 = vsyncpa [#allocation3], 1 }

</bundles_post_ra>
